<compile_context>
chip_gen: v5e
topology: v5e:2x2
jax: 0.10.0
libtpu: 0.0.40
codegen_flags: <defaults>
</compile_context>

<pallas_src>
import jax
import jax.numpy as jnp
from jax.experimental import pallas as pl
from jax.experimental.pallas import tpu as pltpu


# ---------------------------------------------------------------------------
# Kernels
# ---------------------------------------------------------------------------
def fused_encoder_kernel(a_ref, fw1_ref, wc_ref, b1_ref, bc_ref, o_ref):
    """Both GCN layers, everything VMEM-resident (A read from HBM once).

    H   = relu(A @ FW1 + b1)          FW1 = X @ W1 (hoisted to wrapper, bf16)
    OUT = A @ (H @ [W_mu|W_ls]) + [b_mu|b_ls]
    """
    a = a_ref[...]                                                    # (N, N) bf16
    h = jnp.dot(a, fw1_ref[...], preferred_element_type=jnp.float32)  # (N, H) f32
    h = jnp.maximum(h + b1_ref[...], 0.0)
    g = jnp.dot(h.astype(jnp.bfloat16), wc_ref[...],
                preferred_element_type=jnp.float32)                   # (N, O) f32
    o = jnp.dot(a, g.astype(jnp.bfloat16),
                preferred_element_type=jnp.float32)                   # (N, O) f32
    o_ref[...] = (o + bc_ref[...]).astype(o_ref.dtype)


def make_spmm_kernel(apply_relu):
    """One row tile of one GCN layer:  o = [relu](A_tile @ FW + b).

    FW is the pre-transformed (hoisted) feature matrix, resident in VMEM.
    """

    def kernel(a_ref, fw_ref, b_ref, o_ref):
        acc = jnp.dot(a_ref[...], fw_ref[...],
                      preferred_element_type=jnp.float32)   # (TM, Fout) f32
        acc = acc + b_ref[...]                              # f32 bias add (VPU)
        if apply_relu:
            acc = jnp.maximum(acc, 0.0)
        o_ref[...] = acc.astype(o_ref.dtype)

    return kernel


# ---------------------------------------------------------------------------
# Helpers
# ---------------------------------------------------------------------------
def _round_up(v, m):
    return ((v + m - 1) // m) * m


def _pad2(arr, rows, cols, dtype):
    out = jnp.zeros((rows, cols), dtype)
    return out.at[: arr.shape[0], : arr.shape[1]].set(arr.astype(dtype))


def _vmem_capacity_bytes():
    """Per-core VMEM capacity; conservative (v7x) fallback if unknown."""
    cap = None
    try:
        info = pltpu.get_tpu_info()
        for name in ("vmem_capacity_bytes", "vmem_bytes", "vmem_size_bytes"):
            cap = getattr(info, name, None)
            if cap:
                break
    except Exception:
        cap = None
    if not cap or int(cap) < 16 * 1024 * 1024:
        cap = 64 * 1024 * 1024   # v7x per-TensorCore VMEM (smallest current gen)
    return int(cap)


def _tiled_footprint(tm, n_pad, fout):
    """Complete VMEM footprint model for the tiled spmm layer (bytes)."""
    return (2 * tm * n_pad * 2          # double-buffered A row tiles (bf16)
            + 2 * n_pad * fout * 2      # resident FW (conservatively x2 buffers)
            + 2 * tm * fout * 4         # double-buffered output tiles (f32 worst case)
            + 2 * tm * fout * 4         # f32 accumulator / cast temporaries
            + 2 * 8 * fout * 4)         # bias


def _choose_tm(n, fout_max, budget):
    """Largest row tile (multiple of 128) fitting the budget with >= 2 grid steps."""
    tm = 128
    n_pad = _round_up(n, tm)
    # Shrink (multiples of 16 = bf16 sublane tile) only if even 128 does not fit.
    while _tiled_footprint(tm, n_pad, fout_max) > budget and tm > 16:
        tm = max(16, tm // 2)
        n_pad = _round_up(n, tm)
    # Grow to fill the budget; keep >= 2 grid steps (feeds both v7x TCs).
    while True:
        tm2 = tm * 2
        n_pad2 = _round_up(n, tm2)
        if (n_pad2 // tm2 >= 2
                and _tiled_footprint(tm2, n_pad2, fout_max) <= budget):
            tm, n_pad = tm2, n_pad2
        else:
            break
    return tm, n_pad


# ---------------------------------------------------------------------------
# pallas_call wrappers
# ---------------------------------------------------------------------------
def _spmm_layer(a_bf, fw_bf, b_f32, *, tm, apply_relu, out_dtype, cap):
    """Tiled o = [relu](A @ FW + b). a_bf: (Np, Np) bf16, fw_bf: (Np, Fout) bf16."""
    n_pad = a_bf.shape[0]
    fout = fw_bf.shape[1]
    out_bytes = jnp.dtype(out_dtype).itemsize
    grid = (n_pad // tm,)

    fp = _tiled_footprint(tm, n_pad, fout)
    vmem_limit = int(min(int(0.9 * cap), max(32 * 1024 * 1024, int(fp * 1.3))))

    flops = 2 * n_pad * n_pad * fout
    bytes_accessed = (a_bf.size * 2 + fw_bf.size * 2 + b_f32.size * 4
                      + n_pad * fout * out_bytes)

    return pl.pallas_call(
        make_spmm_kernel(apply_relu),
        out_shape=jax.ShapeDtypeStruct((n_pad, fout), out_dtype),
        grid_spec=pltpu.PrefetchScalarGridSpec(
            num_scalar_prefetch=0,
            grid=grid,
            in_specs=[
                pl.BlockSpec((tm, n_pad), lambda i: (i, 0)),    # A row tile (streamed)
                pl.BlockSpec((n_pad, fout), lambda i: (0, 0)),  # FW (resident, const idx)
                pl.BlockSpec((1, fout), lambda i: (0, 0)),      # bias (f32, resident)
            ],
            out_specs=pl.BlockSpec((tm, fout), lambda i: (i, 0)),
        ),
        compiler_params=pltpu.CompilerParams(
            dimension_semantics=("parallel",),
            vmem_limit_bytes=vmem_limit,
        ),
        cost_estimate=pl.CostEstimate(
            flops=int(flops), transcendentals=0,
            bytes_accessed=int(bytes_accessed)),
    )(a_bf, fw_bf, b_f32)


def vgae_encoder(a_hat, x, params, *, force_tiled=False):
    """Forward pass of the VGAE Encoder. Returns (mu, logstd), each [N, dim_out]."""
    n, _ = x.shape
    hid = params["w1"].shape[1]
    dim_out = params["w_mu"].shape[1]

    hid_p = _round_up(hid, 128)          # lane-dense intermediate H
    out_p = _round_up(2 * dim_out, 128)  # lane-dense packed mu|logstd output

    cap = _vmem_capacity_bytes()
    budget = int(0.7 * cap)              # generation-aware working budget

    bf = jnp.bfloat16
    w1_p = _pad2(params["w1"], params["w1"].shape[0], hid_p, bf)
    b1_p = _pad2(params["b1"], 1, hid_p, jnp.float32)
    w_cat = jnp.concatenate([params["w_mu"], params["w_ls"]], axis=1)  # [hid, 2*dim_out]
    b_cat = jnp.concatenate([params["b_mu"], params["b_ls"]], axis=1)  # [1, 2*dim_out]
    wc_p = _pad2(w_cat, hid_p, out_p, bf)
    bc_p = _pad2(b_cat, 1, out_p, jnp.float32)

    # -------- fused single-call fast path (A read from HBM exactly once) ----
    n_pad_f = _round_up(n, 128)
    fp_fused = (n_pad_f * n_pad_f * 2                       # A bf16 (resident)
                + n_pad_f * hid_p * 2                       # FW1 bf16
                + hid_p * out_p * 2                         # Wc bf16
                + n_pad_f * (hid_p * 4 + hid_p * 2          # H f32 + H bf16
                             + out_p * 4 + out_p * 2        # G f32 + G bf16
                             + out_p * 4 + out_p * 4)       # O f32 + output buffer
                + 8 * (hid_p + out_p) * 4)                  # biases
    use_fused = (not force_tiled) and (fp_fused * 1.15 <= budget)

    if use_fused:
        n_pad = n_pad_f
        a_p = _pad2(a_hat, n_pad, n_pad, bf)
        x_p = _pad2(x, n_pad, x.shape[1], bf)
        # Hoisted feature transform (tiny): FW1 = X @ W1, bf16 result.
        fw1 = jnp.dot(x_p, w1_p, preferred_element_type=jnp.float32).astype(bf)

        vmem_limit = int(min(int(0.9 * cap),
                             max(32 * 1024 * 1024, int(fp_fused * 1.2))))
        flops = (2 * n_pad * n_pad * hid_p       # A @ FW1
                 + 2 * n_pad * hid_p * out_p     # H @ Wc
                 + 2 * n_pad * n_pad * out_p)    # A @ G
        bytes_accessed = (n_pad * n_pad * 2 + n_pad * hid_p * 2
                          + hid_p * out_p * 2 + n_pad * out_p * 4)
        o_p = pl.pallas_call(
            fused_encoder_kernel,
            out_shape=jax.ShapeDtypeStruct((n_pad, out_p), jnp.float32),
            compiler_params=pltpu.CompilerParams(vmem_limit_bytes=vmem_limit),
            cost_estimate=pl.CostEstimate(
                flops=int(flops), transcendentals=0,
                bytes_accessed=int(bytes_accessed)),
        )(a_p, fw1, wc_p, b1_p, bc_p)
    else:
        # -------- tiled path (A streamed per layer; FW hoisted) -------------
        tm, n_pad = _choose_tm(n, max(hid_p, out_p), budget)
        a_p = _pad2(a_hat, n_pad, n_pad, bf)
        x_p = _pad2(x, n_pad, x.shape[1], bf)

        fw1 = jnp.dot(x_p, w1_p, preferred_element_type=jnp.float32).astype(bf)
        # Layer 1: H = relu(A @ FW1 + b1), bf16, lane-dense (hid_p = 128).
        h_p = _spmm_layer(a_p, fw1, b1_p, tm=tm, apply_relu=True,
                          out_dtype=jnp.bfloat16, cap=cap)
        # Hoisted second transform: G = H @ [W_mu|W_ls], bf16.
        g = jnp.dot(h_p, wc_p, preferred_element_type=jnp.float32).astype(bf)
        # Layer 2 (fused mu|logstd): OUT = A @ G + [b_mu|b_ls].
        o_p = _spmm_layer(a_p, g, bc_p, tm=tm, apply_relu=False,
                          out_dtype=jnp.float32, cap=cap)

    mu = o_p[:n, :dim_out]
    logstd = o_p[:n, dim_out:2 * dim_out]
    return mu, logstd


# ---------------------------------------------------------------------------
# Glue: dense GCN-normalized adjacency from a COO edge_index
# ---------------------------------------------------------------------------
def gcn_norm_dense(edge_index, num_nodes):
    """Dense D^{-1/2}(A+I)D^{-1/2} from edge_index [2, E] (plain-JAX scatter).
    Note: .set de-duplicates repeated edges (differs from PyG only if the
    input edge_index contains duplicates)."""
    src, dst = edge_index[0], edge_index[1]
    a = jnp.zeros((num_nodes, num_nodes), jnp.float32)
    a = a.at[dst, src].set(1.0)                       # target row <- source col
    a = a + jnp.eye(num_nodes, dtype=jnp.float32)     # self-loops
    deg = jnp.sum(a, axis=1)
    dinv = jnp.where(deg > 0, 1.0 / jnp.sqrt(deg), 0.0)
    return dinv[:, None] * a * dinv[None, :]


def init_params(key, dim_in, dim_out):
    """Glorot-uniform weights, zero biases (PyG GCNConv defaults)."""
    def glorot(k, fan_in, fan_out):
        lim = (6.0 / (fan_in + fan_out)) ** 0.5
        return jax.random.uniform(k, (fan_in, fan_out), jnp.float32, -lim, lim)

    k1, k2, k3 = jax.random.split(key, 3)
    hid = 2 * dim_out
    return {
        "w1":   glorot(k1, dim_in, hid),
        "b1":   jnp.zeros((1, hid), jnp.float32),
        "w_mu": glorot(k2, hid, dim_out),
        "b_mu": jnp.zeros((1, dim_out), jnp.float32),
        "w_ls": glorot(k3, hid, dim_out),
        "b_ls": jnp.zeros((1, dim_out), jnp.float32),
    }


if __name__ == "__main__":
    key = jax.random.PRNGKey(0)
    k_x, k_e, k_p = jax.random.split(key, 3)

    num_nodes = 256
    dim_in = 16
    dim_out = 8
    num_edges = 512

    # node features
    x = jax.random.normal(k_x, (num_nodes, dim_in), jnp.float32)

    # random undirected edge set (no self loops), shape [2, 2*num_edges]
    src = jax.random.randint(k_e, (num_edges,), 0, num_nodes)
    dst = (src + 1 + jax.random.randint(jax.random.fold_in(k_e, 1),
                                        (num_edges,), 0, num_nodes - 1)) % num_nodes
    edge_index = jnp.stack([jnp.concatenate([src, dst]),
                            jnp.concatenate([dst, src])], axis=0)

    a_hat = gcn_norm_dense(edge_index, num_nodes)
    params = init_params(k_p, dim_in, dim_out)

    # Default path (fused single pallas_call for this small size).
    mu, logstd = vgae_encoder(a_hat, x, params)
    jax.block_until_ready((mu, logstd))
    assert mu.shape == (num_nodes, dim_out) and logstd.shape == (num_nodes, dim_out)

    # Tiled path (row-streamed A, hoisted FW) exercised explicitly.
    mu_t, logstd_t = vgae_encoder(a_hat, x, params, force_tiled=True)
    jax.block_until_ready((mu_t, logstd_t))
    assert jnp.allclose(mu, mu_t, atol=1e-3) and jnp.allclose(logstd, logstd_t, atol=1e-3)

    # --- bf16-emulated reference (matches kernel arithmetic; tight check) ---
    bf = jnp.bfloat16
    a_bf, x_bf = a_hat.astype(bf), x.astype(bf)
    xw = jnp.dot(x_bf, params["w1"].astype(bf), preferred_element_type=jnp.float32)
    h = jnp.maximum(jnp.dot(a_bf, xw.astype(bf),
                            preferred_element_type=jnp.float32) + params["b1"], 0.0)
    h_bf = h.astype(bf)
    hwm = jnp.dot(h_bf, params["w_mu"].astype(bf), preferred_element_type=jnp.float32)
    hwl = jnp.dot(h_bf, params["w_ls"].astype(bf), preferred_element_type=jnp.float32)
    mu_emu = jnp.dot(a_bf, hwm.astype(bf), preferred_element_type=jnp.float32) + params["b_mu"]
    ls_emu = jnp.dot(a_bf, hwl.astype(bf), preferred_element_type=jnp.float32) + params["b_ls"]
    assert jnp.allclose(mu, mu_emu, atol=1e-3) and jnp.allclose(logstd, ls_emu, atol=1e-3)
    assert jnp.allclose(mu_t, mu_emu, atol=1e-3) and jnp.allclose(logstd_t, ls_emu, atol=1e-3)

    # --- f32 reference (module semantics; loose check due to bf16 operands) ---
    h_ref = jnp.maximum(a_hat @ (x @ params["w1"]) + params["b1"], 0.0)
    mu_ref = a_hat @ (h_ref @ params["w_mu"]) + params["b_mu"]
    ls_ref = a_hat @ (h_ref @ params["w_ls"]) + params["b_ls"]
    assert jnp.allclose(mu, mu_ref, atol=5e-2) and jnp.allclose(logstd, ls_ref, atol=5e-2)

    print("KERNEL_OK")
</pallas_src>

<mosaic_0001>
module attributes {stable_mosaic.version = 11 : i64} {
  func.func @fused_encoder_kernel(%arg0: memref<256x256xbf16, #tpu.memory_space<vmem>>, %arg1: memref<256x128xbf16, #tpu.memory_space<vmem>>, %arg2: memref<128x128xbf16, #tpu.memory_space<vmem>>, %arg3: memref<1x128xf32, #tpu.memory_space<vmem>>, %arg4: memref<1x128xf32, #tpu.memory_space<vmem>>, %arg5: memref<256x128xf32, #tpu.memory_space<vmem>>) attributes {dimension_semantics = [], scalar_prefetch = 0 : i64, scratch_operands = 0 : i64, tpu.core_type = #tpu.core_type<tc>} {
    %c0 = arith.constant 0 : index
    %c0_0 = arith.constant 0 : index
    %0 = vector.load %arg0[%c0, %c0_0] : memref<256x256xbf16, #tpu.memory_space<vmem>>, vector<256x256xbf16>
    %c0_1 = arith.constant 0 : index
    %c0_2 = arith.constant 0 : index
    %1 = vector.load %arg1[%c0_1, %c0_2] : memref<256x128xbf16, #tpu.memory_space<vmem>>, vector<256x128xbf16>
    %cst = arith.constant dense<0.000000e+00> : vector<256x128xf32>
    %2 = tpu.matmul %0, %1, %cst {dimension_numbers = #tpu.dot_dimension_numbers<[1], [0], [0], [1], [0, 0, 1, 1], [], []>} : vector<256x256xbf16>, vector<256x128xbf16>, vector<256x128xf32> -> vector<256x128xf32>
    %c0_3 = arith.constant 0 : index
    %c0_4 = arith.constant 0 : index
    %3 = vector.load %arg3[%c0_3, %c0_4] : memref<1x128xf32, #tpu.memory_space<vmem>>, vector<1x128xf32>
    %4 = vector.broadcast %3 : vector<1x128xf32> to vector<256x128xf32>
    %5 = arith.addf %2, %4 : vector<256x128xf32>
    %cst_5 = arith.constant 0.000000e+00 : f32
    %6 = vector.broadcast %cst_5 : f32 to vector<256x128xf32>
    %7 = arith.maximumf %5, %6 : vector<256x128xf32>
    %8 = arith.truncf %7 : vector<256x128xf32> to vector<256x128xbf16>
    %c0_6 = arith.constant 0 : index
    %c0_7 = arith.constant 0 : index
    %9 = vector.load %arg2[%c0_6, %c0_7] : memref<128x128xbf16, #tpu.memory_space<vmem>>, vector<128x128xbf16>
    %cst_8 = arith.constant dense<0.000000e+00> : vector<256x128xf32>
    %10 = tpu.matmul %8, %9, %cst_8 {dimension_numbers = #tpu.dot_dimension_numbers<[1], [0], [0], [1], [0, 0, 1, 1], [], []>} : vector<256x128xbf16>, vector<128x128xbf16>, vector<256x128xf32> -> vector<256x128xf32>
    %11 = arith.truncf %10 : vector<256x128xf32> to vector<256x128xbf16>
    %cst_9 = arith.constant dense<0.000000e+00> : vector<256x128xf32>
    %12 = tpu.matmul %0, %11, %cst_9 {dimension_numbers = #tpu.dot_dimension_numbers<[1], [0], [0], [1], [0, 0, 1, 1], [], []>} : vector<256x256xbf16>, vector<256x128xbf16>, vector<256x128xf32> -> vector<256x128xf32>
    %c0_10 = arith.constant 0 : index
    %c0_11 = arith.constant 0 : index
    %13 = vector.load %arg4[%c0_10, %c0_11] : memref<1x128xf32, #tpu.memory_space<vmem>>, vector<1x128xf32>
    %14 = vector.broadcast %13 : vector<1x128xf32> to vector<256x128xf32>
    %15 = arith.addf %12, %14 : vector<256x128xf32>
    %c0_12 = arith.constant 0 : index
    %c0_13 = arith.constant 0 : index
    %16 = vector.load %arg5[%c0_12, %c0_13] : memref<256x128xf32, #tpu.memory_space<vmem>>, vector<256x128xf32>
    tpu.vector_store %arg5[%c0_12, %c0_13], %15 {strides = array<i32>} : memref<256x128xf32, #tpu.memory_space<vmem>>, vector<256x128xf32>,
    return
  }
}

</mosaic_0001>

<bundles_post_ra>
// kernel: tpu_custom_call.1
= control target key start
LH: loop header
LB: loop body
LE: loop exit
PB: predicated region body
PF: predicated region fallthrough
CT: control target
= control target key end

     0   :  { %10 = vsyncpa [#allocation3], 0  ;;  %s1749_s0 = inlined_call_operand.hbm [shape: bf16[256,256], index: 0, kind: input, shape index: {}]   ;;  %s1750_s1 = inlined_call_operand.hbm [shape: bf16[256,128], index: 1, kind: input, shape index: {}]   ;;  %s1751_s2 = inlined_call_operand.hbm [shape: bf16[128,128], index: 2, kind: input, shape index: {}]   ;;  %s1752_s3 = inlined_call_operand.vmem [shape: f32[1,128], index: 3, kind: input, shape index: {}]   ;;  %s1753_s4 = inlined_call_operand.vmem [shape: f32[1,128], index: 4, kind: input, shape index: {}]   ;;  %s1754_s5 = inlined_call_operand.hbm [shape: f32[256,128], index: 5, kind: output, shape index: {}]  }
   0x1   :  { %11 = vsyncpa [#allocation6], 0  ;;  %s30_s20 = sshll.u32 %s1750_s1, 4  ;;  %s31_s20 = int_to_ptr.hbm [resolvable:$true] %s30_s20 }
   0x2   :  { %12 = vsyncpa [#allocation4], 0  ;;  %s1437_s21 = smov [#allocation5]   ;;  %s17_s25 = sshll.u32 %s1749_s0, 4  ;;  %s18_s25 = int_to_ptr.hbm [resolvable:$true] %s17_s25 }
   0x3   :  { %s32_s22 = sshll.u32 %s1437_s21, 4  ;;  %s1438_s26 = smov 64   ;;  %s33_s22 = int_to_ptr.vmem [resolvable:$true] %s32_s22 }
   0x4   :  { %s1439_s27 = smov 4   ;;  %s1440_s28 = smov [#allocation2]  }
   0x5   :  { %38 = dma.hbm_to_vmem [thread:$0]  %s31_s20, 2048, %s33_s22, [#allocation6], %s1438_s26, %s1438_s26, %s1439_s27  }
   0x6   :  { %s19_s29 = sshll.u32 %s1440_s28, 4  ;;  %s1441_s30 = smov 128   ;;  %s20_s29 = int_to_ptr.vmem [resolvable:$true] %s19_s29 }
   0x7   :  { %s1442_s6 = smov 8   ;;  %s43_s8 = sshll.u32 %s1751_s2, 4  ;;  %s44_s8 = int_to_ptr.hbm [resolvable:$true] %s43_s8 }
   0x8   :  { %25 = dma.hbm_to_vmem [thread:$0]  %s18_s25, 4096, %s20_s29, [#allocation3], %s1441_s30, %s1441_s30, %s1442_s6  }
   0x9   :  { %s1443_s9 = smov [#allocation7]  }
   0xa   :  { %s45_s0 = sshll.u32 %s1443_s9, 4  ;;  %s46_s0 = int_to_ptr.vmem [resolvable:$true] %s45_s0 }
   0xb   :  { %51 = dma.hbm_to_vmem [thread:$0]  %s44_s8, 1024, %s46_s0, [#allocation6], %s1438_s26, %s1438_s26, %s1439_s27  }
   0xc   :  { %1431 = dma.done.wait [#allocation3], 4096  }
   0xd   :  { %1432 = vsyncadd [#allocation3], 4294963200 }
   0xe   :  { %1433 = dma.done.wait [#allocation6], 3072  }
   0xf   :  { %1434 = vsyncadd [#allocation6], 4294964224  ;;  %v1284_v0 = vld [vmem:[#allocation5 + $0x38] sm:$0xff]  ;;  %v1283_v1 = vld [vmem:[#allocation5 + $0x30] sm:$0xff]  ;;  %s1007_s15 = sshll.u32 %s1754_s5, 4  ;;  %s1008_s15 = int_to_ptr.hbm [resolvable:$true] %s1007_s15 }
  0x10   :  { %1301 = vmatpush.bf16.msra.mxu1 %v1284_v0  ;;  %392 = vmatpush.bf16.msra.mxu0 %v1284_v0  ;;  %v1282_v2 = vld [vmem:[#allocation5 + $0x28] sm:$0xff]  ;;  %v1281_v3 = vld [vmem:[#allocation5 + $0x20] sm:$0xff]  ;;  %v1280_v4 = vld [vmem:[#allocation5 + $0x18] sm:$0xff] }
  0x11   :  { %1302 = vmatpush.bf16.msra.mxu2 %v1284_v0  ;;  %1303 = vmatpush.bf16.msra.mxu3 %v1284_v0  ;;  %v1279_v5 = vld [vmem:[#allocation5 + $0x10] sm:$0xff]  ;;  %v1278_v6 = vld [vmem:[#allocation5 + $0x8] sm:$0xff]  ;;  %v1277_v7 = vld [vmem:[#allocation5] sm:$0xff] }
  0x12   :  { %v1055_v8 = vld [vmem:[#allocation2 + $0x40] sm:$0xf]  ;;  %v1254_v9 = vld [vmem:[#allocation2 + $0x44] sm:$0xf0]  ;;  %v1292_v11 = vld [vmem:[#allocation5 + $0x78] sm:$0xff] }
  0x13   :  { %v1487_v10 = vor.u32 %v1254_v9, %v1055_v8  ;;  %v1291_v12 = vld [vmem:[#allocation5 + $0x70] sm:$0xff]  ;;  %v1290_v13 = vld [vmem:[#allocation5 + $0x68] sm:$0xff]  ;;  %v1256_v15 = vld [vmem:[#allocation2 + $0x54] sm:$0xf0] }
  0x14   :  { %1304 = vmatpush.bf16.msra.mxu1 %v1283_v1  ;;  %393 = vmatpush.bf16.msra.mxu0 %v1283_v1  ;;  %v1063_v14 = vld [vmem:[#allocation2 + $0x50] sm:$0xf]  ;;  %v1289_v16 = vld [vmem:[#allocation5 + $0x60] sm:$0xff]  ;;  %v1288_v18 = vld [vmem:[#allocation5 + $0x58] sm:$0xff] }
  0x15   :  { %1305 = vmatpush.bf16.msra.mxu2 %v1283_v1  ;;  %1306 = vmatpush.bf16.msra.mxu3 %v1283_v1  ;;  %v1490_v17 = vor.u32 %v1256_v15, %v1063_v14  ;;  %v1023_v19 = vld [vmem:[#allocation2] sm:$0xf]  ;;  %v1246_v20 = vld [vmem:[#allocation2 + $0x4] sm:$0xf0]  ;;  %v1287_v21 = vld [vmem:[#allocation5 + $0x50] sm:$0xff] }
  0x16   :  { %v1493_v22 = vor.u32 %v1246_v20, %v1023_v19  ;;  %v1286_v23 = vld [vmem:[#allocation5 + $0x48] sm:$0xff]  ;;  %v1071_v24 = vld [vmem:[#allocation2 + $0x60] sm:$0xf]  ;;  %v1031_v28 = vld [vmem:[#allocation2 + $0x10] sm:$0xf] }
  0x17   :  { %v1258_v25 = vld [vmem:[#allocation2 + $0x64] sm:$0xf0]  ;;  %v1285_v26 = vld [vmem:[#allocation5 + $0x40] sm:$0xff]  ;;  %v1248_v29 = vld [vmem:[#allocation2 + $0x14] sm:$0xf0] }
  0x18   :  { %1307 = vmatpush.bf16.msra.mxu1 %v1282_v2  ;;  %394 = vmatpush.bf16.msra.mxu0 %v1282_v2  ;;  %v1496_v27 = vor.u32 %v1258_v25, %v1071_v24  ;;  %v1499_v30 = vor.u32 %v1248_v29, %v1031_v28  ;;  %v1079_v31 = vld [vmem:[#allocation2 + $0x70] sm:$0xf]  ;;  %v1260_v32 = vld [vmem:[#allocation2 + $0x74] sm:$0xf0]  ;;  %v1039_v34 = vld [vmem:[#allocation2 + $0x20] sm:$0xf] }
  0x19   :  { %1308 = vmatpush.bf16.msra.mxu2 %v1282_v2  ;;  %1309 = vmatpush.bf16.msra.mxu3 %v1282_v2  ;;  %v1502_v33 = vor.u32 %v1260_v32, %v1079_v31  ;;  %v1250_v35 = vld [vmem:[#allocation2 + $0x24] sm:$0xf0]  ;;  %v1245_v37 = vld [vmem:[#allocation2 + $0x4] sm:$0xf]  ;;  %v1025_v38 = vld [vmem:[#allocation2 + $0x8] sm:$0xf0] }
  0x1a   :  { %v1505_v36 = vor.u32 %v1250_v35, %v1039_v34  ;;  %v1508_v39 = vor.u32 %v1245_v37, %v1025_v38  ;;  %v1047_v40 = vld [vmem:[#allocation2 + $0x30] sm:$0xf]  ;;  %v1252_v41 = vld [vmem:[#allocation2 + $0x34] sm:$0xf0]  ;;  %v1247_v43 = vld [vmem:[#allocation2 + $0x14] sm:$0xf] }
  0x1b   :  { %v1511_v42 = vor.u32 %v1252_v41, %v1047_v40  ;;  %v1033_v44 = vld [vmem:[#allocation2 + $0x18] sm:$0xf0]  ;;  %v1249_v46 = vld [vmem:[#allocation2 + $0x24] sm:$0xf]  ;;  %v1041_v47 = vld [vmem:[#allocation2 + $0x28] sm:$0xf0] }
  0x1c   :  { %1310 = vmatpush.bf16.msra.mxu1 %v1281_v3  ;;  %395 = vmatpush.bf16.msra.mxu0 %v1281_v3  ;;  %v1514_v45 = vor.u32 %v1247_v43, %v1033_v44  ;;  %v1517_v48 = vor.u32 %v1249_v46, %v1041_v47  ;;  %v1087_v49 = vld [vmem:[#allocation2 + $0x80] sm:$0xf]  ;;  %v1262_v50 = vld [vmem:[#allocation2 + $0x84] sm:$0xf0]  ;;  %v1251_v52 = vld [vmem:[#allocation2 + $0x34] sm:$0xf] }
  0x1d   :  { %1311 = vmatpush.bf16.msra.mxu2 %v1281_v3  ;;  %1312 = vmatpush.bf16.msra.mxu3 %v1281_v3  ;;  %v1520_v51 = vor.u32 %v1262_v50, %v1087_v49  ;;  %v1049_v53 = vld [vmem:[#allocation2 + $0x38] sm:$0xf0]  ;;  %v1095_v55 = vld [vmem:[#allocation2 + $0x90] sm:$0xf]  ;;  %v1264_v56 = vld [vmem:[#allocation2 + $0x94] sm:$0xf0] }
  0x1e   :  { %v1523_v54 = vor.u32 %v1251_v52, %v1049_v53  ;;  %v1526_v57 = vor.u32 %v1264_v56, %v1095_v55  ;;  %v1253_v58 = vld [vmem:[#allocation2 + $0x44] sm:$0xf]  ;;  %v1057_v59 = vld [vmem:[#allocation2 + $0x48] sm:$0xf0]  ;;  %v1103_v62 = vld [vmem:[#allocation2 + $0xa0] sm:$0xf] }
  0x1f   :  { %v1529_v60 = vor.u32 %v1253_v58, %v1057_v59  ;;  %v1266_v63 = vld [vmem:[#allocation2 + $0xa4] sm:$0xf0]  ;;  %v1255_v2 = vld [vmem:[#allocation2 + $0x54] sm:$0xf]  ;;  %v1065_v3 = vld [vmem:[#allocation2 + $0x58] sm:$0xf0] }
  0x20   :  { %1313 = vmatpush.bf16.msra.mxu1 %v1280_v4  ;;  %396 = vmatpush.bf16.msra.mxu0 %v1280_v4  ;;  %v1534_v0 = vor.u32 %v1266_v63, %v1103_v62  ;;  %v1111_v8 = vld [vmem:[#allocation2 + $0xb0] sm:$0xf]  ;;  %v1268_v9 = vld [vmem:[#allocation2 + $0xb4] sm:$0xf0]  ;;  %v1297_v14 = vld [vmem:[#allocation7 + $0x20] sm:$0xff] }
  0x21   :  { %1314 = vmatpush.bf16.msra.mxu2 %v1280_v4  ;;  %1315 = vmatpush.bf16.msra.mxu3 %v1280_v4  ;;  %v1300_v4 = vld [vmem:[#allocation7 + $0x38] sm:$0xff]  ;;  %v1257_v15 = vld [vmem:[#allocation2 + $0x64] sm:$0xf]  ;;  %v1089_v38 = vld [vmem:[#allocation2 + $0x88] sm:$0xf0] }
  0x22   :  { %v1293_v25 = vld [vmem:[#allocation7] sm:$0xff]  ;;  %v1081_v28 = vld [vmem:[#allocation2 + $0x78] sm:$0xf0]  ;;  %v1263_v58 = vld [vmem:[#allocation2 + $0x94] sm:$0xf] }
  0x23   :  { %v1261_v37 = vld [vmem:[#allocation2 + $0x84] sm:$0xf]  ;;  %v1568_v43 = vld [vmem:[%s1752_s3] ss:$0 sm:$0xff]  ;;  %v1097_v59 = vld [vmem:[#allocation2 + $0x98] sm:$0xf0] }
  0x24   :  { %1316 = vmatpush.bf16.msra.mxu1 %v1279_v5  ;;  %397 = vmatpush.bf16.msra.mxu0 %v1279_v5  ;;  %v1563_v40 = vor.u32 %v1261_v37, %v1089_v38  ;;  %v1573_v63 = vor.u32 %v1263_v58, %v1097_v59  ;;  %v1127_v37 = vld [vmem:[#allocation2 + $0xd0] sm:$0xf]  ;;  %v1272_v38 = vld [vmem:[#allocation2 + $0xd4] sm:$0xf0]  ;;  %v1113_v58 = vld [vmem:[#allocation2 + $0xb8] sm:$0xf0] }
  0x25   :  { %1317 = vmatpush.bf16.msra.mxu2 %v1279_v5  ;;  %1318 = vmatpush.bf16.msra.mxu3 %v1279_v5  ;;  %v1539_v5 = vor.u32 %v1255_v2, %v1065_v3  ;;  %v1119_v3 = vld [vmem:[#allocation2 + $0xc0] sm:$0xf] }
  0x28   :  { %1319 = vmatpush.bf16.msra.mxu1 %v1278_v6  ;;  %398 = vmatpush.bf16.msra.mxu0 %v1278_v6 }
  0x29   :  { %1320 = vmatpush.bf16.msra.mxu2 %v1278_v6  ;;  %1321 = vmatpush.bf16.msra.mxu3 %v1278_v6 }
  0x2c   :  { %1322 = vmatpush.bf16.msra.mxu1 %v1277_v7  ;;  %399 = vmatpush.bf16.msra.mxu0 %v1277_v7 }
  0x2d   :  { %1323 = vmatpush.bf16.msra.mxu2 %v1277_v7  ;;  %1324 = vmatpush.bf16.msra.mxu3 %v1277_v7  ;;  %v1299_v7 = vld [vmem:[#allocation7 + $0x30] sm:$0xff] }
  0x2f   :  { %420 = vmatmul.bf16.vlgmr.msra.gmra.mxu1 %v1487_v10  ;;  %400 = vmatmul.bf16.vlgmr.msra.gmra.mxu0 %v1493_v22 }
  0x30   :  { %481 = vmatpush.bf16.msrb.mxu1 %v1292_v11  ;;  %440 = vmatmul.bf16.vlgmr.msra.gmra.mxu2 %v1520_v51  ;;  %v1544_v11 = vor.u32 %v1268_v9, %v1111_v8 }
  0x31   :  { %682 = vmatpush.bf16.msrb.mxu2 %v1300_v4  ;;  %v1270_v4 = vld [vmem:[#allocation2 + $0xc4] sm:$0xf0] }
  0x34   :  { %482 = vmatpush.bf16.msrb.mxu1 %v1291_v12  ;;  %v1298_v12 = vld [vmem:[#allocation7 + $0x28] sm:$0xff] }
  0x35   :  { %683 = vmatpush.bf16.msrb.mxu2 %v1299_v7  ;;  %v1575_v7 = vor.u32 %v1270_v4, %v1119_v3  ;;  %v1135_v3 = vld [vmem:[#allocation2 + $0xe0] sm:$0xf]  ;;  %v1274_v4 = vld [vmem:[#allocation2 + $0xe4] sm:$0xf0] }
  0x37   :  { %460 = vmatmul.bf16.vlgmr.msra.gmra.mxu3 %v1575_v7 }
  0x38   :  { %483 = vmatpush.bf16.msrb.mxu1 %v1290_v13 }
  0x39   :  { %684 = vmatpush.bf16.msrb.mxu2 %v1298_v12 }
  0x3c   :  { %484 = vmatpush.bf16.msrb.mxu1 %v1289_v16  ;;  %v1073_v16 = vld [vmem:[#allocation2 + $0x68] sm:$0xf0] }
  0x3d   :  { %685 = vmatpush.bf16.msrb.mxu2 %v1297_v14  ;;  %v1549_v19 = vor.u32 %v1257_v15, %v1073_v16 }
  0x3f   :  { %425 = vmatmul.bf16.gmra.mxu1 %v1490_v17  ;;  %405 = vmatmul.bf16.gmra.mxu0 %v1499_v30 }
  0x40   :  { %485 = vmatpush.bf16.msrb.mxu1 %v1288_v18  ;;  %445 = vmatmul.bf16.gmra.mxu2 %v1526_v57  ;;  %v1296_v18 = vld [vmem:[#allocation7 + $0x18] sm:$0xff] }
  0x41   :  { %686 = vmatpush.bf16.msrb.mxu2 %v1296_v18 }
  0x44   :  { %486 = vmatpush.bf16.msrb.mxu1 %v1287_v21  ;;  %v1295_v21 = vld [vmem:[#allocation7 + $0x10] sm:$0xff] }
  0x45   :  { %687 = vmatpush.bf16.msrb.mxu2 %v1295_v21 }
  0x48   :  { %487 = vmatpush.bf16.msrb.mxu1 %v1286_v23  ;;  %v1294_v23 = vld [vmem:[#allocation7 + $0x8] sm:$0xff] }
  0x49   :  { %688 = vmatpush.bf16.msrb.mxu2 %v1294_v23  ;;  %v1265_v23 = vld [vmem:[#allocation2 + $0xa4] sm:$0xf] }
  0x4c   :  { %488 = vmatpush.bf16.msrb.mxu1 %v1285_v26  ;;  %v1259_v26 = vld [vmem:[#allocation2 + $0x74] sm:$0xf] }
  0x4d   :  { %689 = vmatpush.bf16.msrb.mxu2 %v1293_v25  ;;  %v1556_v31 = vor.u32 %v1259_v26, %v1081_v28  ;;  %v1105_v25 = vld [vmem:[#allocation2 + $0xa8] sm:$0xf0] }
  0x4e   :  { %v1581_v28 = vor.u32 %v1265_v23, %v1105_v25  ;;  %v1269_v25 = vld [vmem:[#allocation2 + $0xc4] sm:$0xf] }
  0x4f   :  { %430 = vmatmul.bf16.gmra.mxu1 %v1496_v27  ;;  %410 = vmatmul.bf16.gmra.mxu0 %v1505_v36 }
  0x50   :  { %450 = vmatmul.bf16.gmra.mxu2 %v1534_v0 }
  0x5f   :  { %435 = vmatmul.bf16.gmra.mxu1 %v1502_v33  ;;  %415 = vmatmul.bf16.gmra.mxu0 %v1511_v42 }
  0x60   :  { %455 = vmatmul.bf16.gmra.mxu2 %v1544_v11 }
  0x6f   :  { %489 = vmatmul.bf16.vlgmr.msrb.gmra.mxu1 %v1508_v39 }
  0x7f   :  { %494 = vmatmul.bf16.gmra.mxu1 %v1514_v45 }
  0x8f   :  { %499 = vmatmul.bf16.gmra.mxu1 %v1517_v48 }
  0x9f   :  { %504 = vmatmul.bf16.gmra.mxu1 %v1523_v54 }
  0xac   :  { %v1531_v61 = vpop.f32.mrf.mxu1  ;;  %v401_v29 = vpop.f32.mrf.mxu0 }
  0xad   :  { %v402_v46 = vadd.f32 %v1568_v43, %v401_v29 }
  0xaf   :  { %509 = vmatmul.bf16.gmra.mxu1 %v1529_v60 }
  0xb4   :  { %v1537_v1 = vpop.f32.mrf.mxu1  ;;  %v403_v35 = vpop.f32.mrf.mxu0 }
  0xb5   :  { %v404_v47 = vadd.f32 %v1568_v43, %v403_v35 }
  0xbc   :  { %v1541_v6 = vpop.f32.mrf.mxu1  ;;  %v406_v44 = vpop.f32.mrf.mxu0 }
  0xbd   :  { %v407_v8 = vadd.f32 %v1568_v43, %v406_v44 }
  0xbf   :  { %514 = vmatmul.bf16.gmra.mxu1 %v1539_v5 }
  0xc4   :  { %v1547_v13 = vpop.f32.mrf.mxu1  ;;  %v408_v56 = vpop.f32.mrf.mxu0 }
  0xc5   :  { %v409_v12 = vadd.f32 %v1568_v43, %v408_v56  ;;  %v1267_v56 = vld [vmem:[#allocation2 + $0xb4] sm:$0xf] }
  0xcc   :  { %v1551_v20 = vpop.f32.mrf.mxu1  ;;  %v411_v9 = vpop.f32.mrf.mxu0 }
  0xcd   :  { %v412_v44 = vadd.f32 %v1568_v43, %v411_v9 }
  0xcf   :  { %519 = vmatmul.bf16.gmra.mxu1 %v1549_v19 }
  0xd4   :  { %v1554_v24 = vpop.f32.mrf.mxu1  ;;  %v413_v29 = vpop.f32.mrf.mxu0 }
  0xdc   :  { %v1558_v32 = vpop.f32.mrf.mxu1 }
  0xdf   :  { %524 = vmatmul.bf16.gmra.mxu1 %v1556_v31 }
  0xe4   :  { %v1561_v34 = vpop.f32.mrf.mxu1 }
  0xec   :  { %v490_v41 = vpop.f32.mrf.mxu1 }
  0xed   :  { %v491_v49 = vadd.f32 %v490_v41, %v402_v46  ;;  %v1583_v41 = vor.u32 %v1272_v38, %v1127_v37  ;;  %v414_v46 = vadd.f32 %v1568_v43, %v413_v29  ;;  %v1143_v38 = vld [vmem:[#allocation2 + $0xf0] sm:$0xf] }
  0xef   :  { %529 = vmatmul.bf16.gmra.mxu1 %v1563_v40  ;;  %v570_v53 = vmax.f32 %v491_v49, 0.0  ;;  %465 = vmatmul.bf16.gmra.mxu3 %v1583_v41 }
  0xf4   :  { %v492_v50 = vpop.f32.mrf.mxu1 }
  0xf5   :  { %v493_v52 = vadd.f32 %v492_v50, %v404_v47 }
  0xf7   :  { %v571_v55 = vmax.f32 %v493_v52, 0.0  ;;  %v416_v52 = vpop.f32.mrf.mxu0 }
  0xf8   :  { %v417_v9 = vadd.f32 %v1568_v43, %v416_v52 }
  0xf9   :  { %v602_v62 = vpack.c.bf16 %v571_v55, %v570_v53 }
  0xfb   :  { %690 = vmatmul.bf16.vlgmr.msrb.gmra.mxu2 %v602_v62  ;;  %v1589_v62 = vor.u32 %v1267_v56, %v1113_v58 }
  0xfc   :  { %v495_v2 = vpop.f32.mrf.mxu1 }
  0xfd   :  { %v496_v14 = vadd.f32 %v495_v2, %v407_v8  ;;  %v1591_v8 = vor.u32 %v1274_v4, %v1135_v3 }
  0xff   :  { %534 = vmatmul.bf16.gmra.mxu1 %v1573_v63  ;;  %v572_v18 = vmax.f32 %v496_v14, 0.0  ;;  %470 = vmatmul.bf16.gmra.mxu3 %v1591_v8 }
 0x104   :  { %v497_v15 = vpop.f32.mrf.mxu1 }
 0x105   :  { %v498_v16 = vadd.f32 %v497_v15, %v409_v12  ;;  %v418_v12 = vpop.f32.mrf.mxu0 }
 0x106   :  { %v419_v14 = vadd.f32 %v1568_v43, %v418_v12 }
 0x107   :  { %v573_v21 = vmax.f32 %v498_v16, 0.0 }
 0x109   :  { %v603_v26 = vpack.c.bf16 %v573_v21, %v572_v18 }
 0x10b   :  { %695 = vmatmul.bf16.gmra.mxu2 %v603_v26  ;;  %v1121_v26 = vld [vmem:[#allocation2 + $0xc8] sm:$0xf0] }
 0x10c   :  { %v500_v35 = vpop.f32.mrf.mxu1 }
 0x10d   :  { %v501_v47 = vadd.f32 %v500_v35, %v412_v44  ;;  %v1597_v35 = vor.u32 %v1269_v25, %v1121_v26  ;;  %v1276_v44 = vld [vmem:[#allocation2 + $0xf4] sm:$0xf0]  ;;  %v1273_v25 = vld [vmem:[#allocation2 + $0xe4] sm:$0xf]  ;;  %v1137_v26 = vld [vmem:[#allocation2 + $0xe8] sm:$0xf0] }
 0x10f   :  { %539 = vmatmul.bf16.gmra.mxu1 %v1581_v28  ;;  %v574_v53 = vmax.f32 %v501_v47, 0.0  ;;  %v441_v47 = vpop.f32.mrf.mxu2 }
 0x114   :  { %v502_v49 = vpop.f32.mrf.mxu1 }
 0x115   :  { %v503_v50 = vadd.f32 %v502_v49, %v414_v46  ;;  %v1599_v46 = vor.u32 %v1276_v44, %v1143_v38  ;;  %v422_v49 = vadd.f32 %v1568_v43, %v1531_v61  ;;  %v427_v61 = vadd.f32 %v1568_v43, %v1541_v6 }
 0x116   :  { %v432_v6 = vadd.f32 %v1568_v43, %v1551_v20  ;;  %v437_v20 = vadd.f32 %v1568_v43, %v1558_v32 }
 0x117   :  { %v575_v55 = vmax.f32 %v503_v50, 0.0  ;;  %475 = vmatmul.bf16.gmra.mxu3 %v1599_v46  ;;  %v424_v50 = vadd.f32 %v1568_v43, %v1537_v1  ;;  %v443_v4 = vpop.f32.mrf.mxu2  ;;  %v429_v1 = vadd.f32 %v1568_v43, %v1547_v13  ;;  %v434_v13 = vadd.f32 %v1568_v43, %v1554_v24 }
 0x118   :  { %v439_v24 = vadd.f32 %v1568_v43, %v1561_v34 }
 0x119   :  { %v604_v59 = vpack.c.bf16 %v575_v55, %v574_v53 }
 0x11b   :  { %700 = vmatmul.bf16.gmra.mxu2 %v604_v59  ;;  %v1271_v59 = vld [vmem:[#allocation2 + $0xd4] sm:$0xf] }
 0x11c   :  { %v505_v2 = vpop.f32.mrf.mxu1 }
 0x11d   :  { %v506_v15 = vadd.f32 %v505_v2, %v417_v9  ;;  %v1129_v2 = vld [vmem:[#allocation2 + $0xd8] sm:$0xf0] }
 0x11e   :  { %v1607_v9 = vor.u32 %v1271_v59, %v1129_v2  ;;  %v1145_v59 = vld [vmem:[#allocation2 + $0xf8] sm:$0xf0] }
 0x11f   :  { %544 = vmatmul.bf16.gmra.mxu1 %v1589_v62  ;;  %v576_v21 = vmax.f32 %v506_v15, 0.0 }
 0x124   :  { %v507_v16 = vpop.f32.mrf.mxu1 }
 0x125   :  { %v508_v18 = vadd.f32 %v507_v16, %v419_v14  ;;  %v446_v16 = vpop.f32.mrf.mxu2 }
 0x127   :  { %v577_v23 = vmax.f32 %v508_v18, 0.0 }
 0x129   :  { %v605_v29 = vpack.c.bf16 %v577_v23, %v576_v21 }
 0x12b   :  { %705 = vmatmul.bf16.gmra.mxu2 %v605_v29 }
 0x12c   :  { %v510_v37 = vpop.f32.mrf.mxu1 }
 0x12d   :  { %v511_v52 = vadd.f32 %v510_v37, %v422_v49  ;;  %v1614_v37 = vor.u32 %v1273_v25, %v1137_v26  ;;  %v448_v44 = vpop.f32.mrf.mxu2 }
 0x12f   :  { %549 = vmatmul.bf16.gmra.mxu1 %v1597_v35  ;;  %v578_v56 = vmax.f32 %v511_v52, 0.0 }
 0x134   :  { %v512_v53 = vpop.f32.mrf.mxu1 }
 0x135   :  { %v513_v55 = vadd.f32 %v512_v53, %v424_v50 }
 0x137   :  { %v579_v58 = vmax.f32 %v513_v55, 0.0 }
 0x139   :  { %v606_v3 = vpack.c.bf16 %v579_v58, %v578_v56  ;;  %v451_v56 = vpop.f32.mrf.mxu2  ;;  %v1275_v58 = vld [vmem:[#allocation2 + $0xf4] sm:$0xf] }
 0x13b   :  { %710 = vmatmul.bf16.gmra.mxu2 %v606_v3  ;;  %v1621_v3 = vor.u32 %v1275_v58, %v1145_v59  ;;  %v447_v58 = vadd.f32 %v1568_v43, %v446_v16  ;;  %v449_v59 = vadd.f32 %v1568_v43, %v448_v44 }
 0x13c   :  { %v515_v12 = vpop.f32.mrf.mxu1 }
 0x13d   :  { %v516_v14 = vadd.f32 %v515_v12, %v427_v61 }
 0x13f   :  { %554 = vmatmul.bf16.gmra.mxu1 %v1607_v9  ;;  %v580_v21 = vmax.f32 %v516_v14, 0.0 }
 0x141   :  { %v453_v61 = vpop.f32.mrf.mxu2 }
 0x142   :  { %v454_v16 = vadd.f32 %v1568_v43, %v453_v61 }
 0x144   :  { %v517_v15 = vpop.f32.mrf.mxu1 }
 0x145   :  { %v518_v18 = vadd.f32 %v517_v15, %v429_v1 }
 0x147   :  { %v581_v23 = vmax.f32 %v518_v18, 0.0 }
 0x149   :  { %v607_v29 = vpack.c.bf16 %v581_v23, %v580_v21  ;;  %v456_v25 = vpop.f32.mrf.mxu2 }
 0x14b   :  { %715 = vmatmul.bf16.gmra.mxu2 %v607_v29  ;;  %v442_v29 = vadd.f32 %v1568_v43, %v441_v47 }
 0x14c   :  { %v520_v38 = vpop.f32.mrf.mxu1 }
 0x14d   :  { %v521_v49 = vadd.f32 %v520_v38, %v432_v6  ;;  %v444_v38 = vadd.f32 %v1568_v43, %v443_v4 }
 0x14f   :  { %559 = vmatmul.bf16.gmra.mxu1 %v1614_v37  ;;  %v582_v53 = vmax.f32 %v521_v49, 0.0 }
 0x151   :  { %v458_v49 = vpop.f32.mrf.mxu2 }
 0x152   :  { %v459_v61 = vadd.f32 %v1568_v43, %v458_v49 }
 0x154   :  { %v522_v50 = vpop.f32.mrf.mxu1 }
 0x155   :  { %v523_v52 = vadd.f32 %v522_v50, %v434_v13 }
 0x157   :  { %v583_v55 = vmax.f32 %v523_v52, 0.0 }
 0x159   :  { %v608_v2 = vpack.c.bf16 %v583_v55, %v582_v53 }
 0x15b   :  { %720 = vmatmul.bf16.gmra.mxu2 %v608_v2 }
 0x15c   :  { %v525_v12 = vpop.f32.mrf.mxu1 }
 0x15d   :  { %v526_v1 = vadd.f32 %v525_v12, %v437_v20 }
 0x15f   :  { %564 = vmatmul.bf16.gmra.mxu1 %v1621_v3  ;;  %v584_v18 = vmax.f32 %v526_v1, 0.0 }
 0x164   :  { %v527_v14 = vpop.f32.mrf.mxu1 }
 0x165   :  { %v528_v15 = vadd.f32 %v527_v14, %v439_v24 }
 0x167   :  { %v585_v21 = vmax.f32 %v528_v15, 0.0 }
 0x169   :  { %v609_v23 = vpack.c.bf16 %v585_v21, %v584_v18  ;;  %v452_v21 = vadd.f32 %v1568_v43, %v451_v56  ;;  %v457_v56 = vadd.f32 %v1568_v43, %v456_v25 }
 0x16b   :  { %725 = vmatmul.bf16.gmra.mxu2 %v609_v23 }
 0x16c   :  { %v530_v26 = vpop.f32.mrf.mxu1 }
 0x16d   :  { %v531_v6 = vadd.f32 %v530_v26, %v442_v29 }
 0x16f   :  { %v586_v50 = vmax.f32 %v531_v6, 0.0 }
 0x174   :  { %v532_v13 = vpop.f32.mrf.mxu1 }
 0x175   :  { %v533_v32 = vadd.f32 %v532_v13, %v444_v38 }
 0x177   :  { %v587_v52 = vmax.f32 %v533_v32, 0.0 }
 0x179   :  { %v610_v34 = vpack.c.bf16 %v587_v52, %v586_v50  ;;  %v461_v50 = vpop.f32.mrf.mxu3 }
 0x17a   :  { %v462_v25 = vadd.f32 %v1568_v43, %v461_v50 }
 0x17b   :  { %730 = vmatmul.bf16.gmra.mxu2 %v610_v34 }
 0x17c   :  { %v535_v53 = vpop.f32.mrf.mxu1 }
 0x17d   :  { %v536_v2 = vadd.f32 %v535_v53, %v447_v58 }
 0x17e   :  { %v1630_v55 = vpop.f32.mrf.mxu2 }
 0x17f   :  { %v588_v4 = vmax.f32 %v536_v2, 0.0 }
 0x184   :  { %v537_v12 = vpop.f32.mrf.mxu1 }
 0x185   :  { %v538_v47 = vadd.f32 %v537_v12, %v449_v59  ;;  %v463_v59 = vpop.f32.mrf.mxu3 }
 0x186   :  { %v1634_v20 = vpop.f32.mrf.mxu2  ;;  %v464_v49 = vadd.f32 %v1568_v43, %v463_v59 }
 0x187   :  { %v589_v24 = vmax.f32 %v538_v47, 0.0 }
 0x189   :  { %v611_v14 = vpack.c.bf16 %v589_v24, %v588_v4 }
 0x18b   :  { %735 = vmatmul.bf16.gmra.mxu2 %v611_v14 }
 0x18c   :  { %v540_v15 = vpop.f32.mrf.mxu1 }
 0x18d   :  { %v541_v44 = vadd.f32 %v540_v15, %v452_v21 }
 0x18e   :  { %v1638_v18 = vpop.f32.mrf.mxu2 }
 0x18f   :  { %v590_v38 = vmax.f32 %v541_v44, 0.0 }
 0x194   :  { %v542_v23 = vpop.f32.mrf.mxu1 }
 0x195   :  { %v543_v26 = vadd.f32 %v542_v23, %v454_v16  ;;  %v466_v16 = vpop.f32.mrf.mxu3 }
 0x196   :  { %v1642_v29 = vpop.f32.mrf.mxu2 }
 0x197   :  { %v591_v6 = vmax.f32 %v543_v26, 0.0 }
 0x199   :  { %v612_v32 = vpack.c.bf16 %v591_v6, %v590_v38 }
 0x19b   :  { %740 = vmatmul.bf16.gmra.mxu2 %v612_v32 }
 0x19c   :  { %v545_v52 = vpop.f32.mrf.mxu1 }
 0x19d   :  { %v546_v53 = vadd.f32 %v545_v52, %v457_v56  ;;  %v468_v56 = vpop.f32.mrf.mxu3 }
 0x19e   :  { %v1646_v34 = vpop.f32.mrf.mxu2  ;;  %v469_v50 = vadd.f32 %v1568_v43, %v468_v56 }
 0x19f   :  { %v592_v47 = vmax.f32 %v546_v53, 0.0 }
 0x1a4   :  { %v547_v58 = vpop.f32.mrf.mxu1 }
 0x1a5   :  { %v548_v2 = vadd.f32 %v547_v58, %v459_v61 }
 0x1a6   :  { %v1650_v12 = vpop.f32.mrf.mxu2 }
 0x1a7   :  { %v593_v4 = vmax.f32 %v548_v2, 0.0  ;;  %v773_v24 = vpack.c.bf16 %v1650_v12, %v1646_v34  ;;  %v467_v2 = vadd.f32 %v1568_v43, %v466_v16 }
 0x1a9   :  { %v613_v14 = vpack.c.bf16 %v593_v4, %v592_v47  ;;  %v471_v47 = vpop.f32.mrf.mxu3 }
 0x1ab   :  { %745 = vmatmul.bf16.gmra.mxu2 %v613_v14 }
 0x1ac   :  { %v550_v15 = vpop.f32.mrf.mxu1 }
 0x1ad   :  { %v551_v44 = vadd.f32 %v550_v15, %v462_v25 }
 0x1ae   :  { %v1654_v21 = vpop.f32.mrf.mxu2 }
 0x1af   :  { %v594_v6 = vmax.f32 %v551_v44, 0.0 }
 0x1b4   :  { %v552_v23 = vpop.f32.mrf.mxu1 }
 0x1b5   :  { %v553_v26 = vadd.f32 %v552_v23, %v464_v49  ;;  %v473_v23 = vpop.f32.mrf.mxu3 }
 0x1b6   :  { %v708_v38 = vpop.f32.mrf.mxu2 }
 0x1b7   :  { %v595_v32 = vmax.f32 %v553_v26, 0.0  ;;  %v774_v52 = vpack.c.bf16 %v708_v38, %v1654_v21  ;;  %v472_v38 = vadd.f32 %v1568_v43, %v471_v47 }
 0x1b9   :  { %v614_v61 = vpack.c.bf16 %v595_v32, %v594_v6  ;;  %v474_v6 = vadd.f32 %v1568_v43, %v473_v23 }
 0x1bb   :  { %750 = vmatmul.bf16.gmra.mxu2 %v614_v61 }
 0x1bc   :  { %v555_v53 = vpop.f32.mrf.mxu1 }
 0x1bd   :  { %v556_v4 = vadd.f32 %v555_v53, %v467_v2  ;;  %v476_v1 = vpop.f32.mrf.mxu3 }
 0x1be   :  { %v711_v58 = vpop.f32.mrf.mxu2 }
 0x1bf   :  { %v596_v25 = vmax.f32 %v556_v4, 0.0 }
 0x1c4   :  { %v557_v59 = vpop.f32.mrf.mxu1 }
 0x1c5   :  { %v558_v14 = vadd.f32 %v557_v59, %v469_v50 }
 0x1c6   :  { %v713_v15 = vpop.f32.mrf.mxu2 }
 0x1c7   :  { %v597_v49 = vmax.f32 %v558_v14, 0.0  ;;  %v477_v14 = vadd.f32 %v1568_v43, %v476_v1  ;;  %v775_v1 = vpack.c.bf16 %v713_v15, %v711_v58 }
 0x1c9   :  { %v615_v44 = vpack.c.bf16 %v597_v49, %v596_v25  ;;  %v478_v25 = vpop.f32.mrf.mxu3 }
 0x1ca   :  { %v479_v49 = vadd.f32 %v1568_v43, %v478_v25 }
 0x1cb   :  { %755 = vmatmul.bf16.gmra.mxu2 %v615_v44 }
 0x1cc   :  { %v560_v21 = vpop.f32.mrf.mxu1 }
 0x1cd   :  { %v561_v32 = vadd.f32 %v560_v21, %v472_v38 }
 0x1ce   :  { %v716_v26 = vpop.f32.mrf.mxu2 }
 0x1cf   :  { %v598_v53 = vmax.f32 %v561_v32, 0.0 }
 0x1d4   :  { %v562_v16 = vpop.f32.mrf.mxu1 }
 0x1d5   :  { %v563_v61 = vadd.f32 %v562_v16, %v474_v6 }
 0x1d6   :  { %v718_v56 = vpop.f32.mrf.mxu2 }
 0x1d7   :  { %v599_v2 = vmax.f32 %v563_v61, 0.0 }
 0x1d9   :  { %v616_v50 = vpack.c.bf16 %v599_v2, %v598_v53 }
 0x1db   :  { %760 = vmatmul.bf16.gmra.mxu2 %v616_v50  ;;  %v776_v50 = vpack.c.bf16 %v718_v56, %v716_v26 }
 0x1dc   :  { %v565_v4 = vpop.f32.mrf.mxu1 }
 0x1dd   :  { %v566_v44 = vadd.f32 %v565_v4, %v477_v14  ;;  %v1755_v14 = vpack.c.bf16 %v1642_v29, %v1638_v18 }
 0x1de   :  { %v721_v59 = vpop.f32.mrf.mxu2 }
 0x1df   :  { %v600_v21 = vmax.f32 %v566_v44, 0.0 }
 0x1e4   :  { %v567_v47 = vpop.f32.mrf.mxu1 }
 0x1e5   :  { %v568_v13 = vadd.f32 %v567_v47, %v479_v49 }
 0x1e6   :  { %v723_v23 = vpop.f32.mrf.mxu2 }
 0x1e7   :  { %v601_v38 = vmax.f32 %v568_v13, 0.0  ;;  %v777_v53 = vpack.c.bf16 %v723_v23, %v721_v59  ;;  %v1756_v59 = vpack.c.bf16 %v1634_v20, %v1630_v55 }
 0x1e9   :  { %v617_v6 = vpack.c.bf16 %v601_v38, %v600_v21 }
 0x1eb   :  { %765 = vmatmul.bf16.gmra.mxu2 %v617_v6 }
 0x1ee   :  { %v726_v16 = vpop.f32.mrf.mxu2 }
 0x1f6   :  { %v728_v32 = vpop.f32.mrf.mxu2 }
 0x1f7   :  { %v778_v61 = vpack.c.bf16 %v728_v32, %v726_v16 }
 0x1f9   :  { %791 = vmatpush.bf16.msrb.mxu3 %v778_v61 }
 0x1fd   :  { %792 = vmatpush.bf16.msrb.mxu3 %v777_v53 }
 0x1fe   :  { %v731_v2 = vpop.f32.mrf.mxu2 }
 0x201   :  { %793 = vmatpush.bf16.msrb.mxu3 %v776_v50 }
 0x205   :  { %794 = vmatpush.bf16.msrb.mxu3 %v775_v1 }
 0x206   :  { %v733_v43 = vpop.f32.mrf.mxu2 }
 0x207   :  { %v779_v4 = vpack.c.bf16 %v733_v43, %v731_v2 }
 0x209   :  { %795 = vmatpush.bf16.msrb.mxu3 %v774_v52 }
 0x20d   :  { %796 = vmatpush.bf16.msrb.mxu3 %v773_v24 }
 0x20e   :  { %v736_v13 = vpop.f32.mrf.mxu2 }
 0x211   :  { %797 = vmatpush.bf16.msrb.mxu3 %v1755_v14 }
 0x215   :  { %798 = vmatpush.bf16.msrb.mxu3 %v1756_v59 }
 0x216   :  { %v738_v26 = vpop.f32.mrf.mxu2 }
 0x217   :  { %v780_v56 = vpack.c.bf16 %v738_v26, %v736_v13 }
 0x218   :  { %799 = vmatmul.bf16.vlgmr.msrb.gmra.mxu3 %v1493_v22 }
 0x21e   :  { %v741_v58 = vpop.f32.mrf.mxu2 }
 0x226   :  { %v743_v15 = vpop.f32.mrf.mxu2 }
 0x227   :  { %v781_v52 = vpack.c.bf16 %v743_v15, %v741_v58 }
 0x228   :  { %804 = vmatmul.bf16.gmra.mxu3 %v1499_v30 }
 0x22e   :  { %v746_v34 = vpop.f32.mrf.mxu2 }
 0x236   :  { %v748_v12 = vpop.f32.mrf.mxu2 }
 0x237   :  { %v782_v24 = vpack.c.bf16 %v748_v12, %v746_v34 }
 0x238   :  { %809 = vmatmul.bf16.gmra.mxu3 %v1505_v36 }
 0x23e   :  { %v751_v18 = vpop.f32.mrf.mxu2 }
 0x246   :  { %v753_v29 = vpop.f32.mrf.mxu2 }
 0x247   :  { %v783_v23 = vpack.c.bf16 %v753_v29, %v751_v18 }
 0x248   :  { %814 = vmatmul.bf16.gmra.mxu3 %v1511_v42  ;;  %v1699_v42 = vld [vmem:[%s1753_s4] ss:$0 sm:$0xff]  ;;  %s1444_s4 = smov [#allocation8]  }
 0x249   :  { %s1005_s12 = sshll.u32 %s1444_s4, 4  ;;  %s1006_s12 = int_to_ptr.vmem [resolvable:$true] %s1005_s12 }
 0x24e   :  { %v756_v55 = vpop.f32.mrf.mxu2 }
 0x256   :  { %v758_v20 = vpop.f32.mrf.mxu2 }
 0x257   :  { %v784_v36 = vpack.c.bf16 %v758_v20, %v756_v55 }
 0x258   :  { %819 = vmatmul.bf16.gmra.mxu3 %v1487_v10 }
 0x25e   :  { %v761_v25 = vpop.f32.mrf.mxu2 }
 0x266   :  { %v763_v22 = vpop.f32.mrf.mxu2 }
 0x267   :  { %v785_v47 = vpack.c.bf16 %v763_v22, %v761_v25 }
 0x268   :  { %824 = vmatmul.bf16.gmra.mxu3 %v1490_v17 }
 0x26e   :  { %v766_v49 = vpop.f32.mrf.mxu2 }
 0x276   :  { %v768_v44 = vpop.f32.mrf.mxu2 }
 0x277   :  { %v786_v30 = vpack.c.bf16 %v768_v44, %v766_v49 }
 0x278   :  { %829 = vmatmul.bf16.gmra.mxu3 %v1496_v27 }
 0x279   :  { %880 = vmatpush.bf16.msrb.mxu0 %v786_v30 }
 0x27d   :  { %881 = vmatpush.bf16.msrb.mxu0 %v785_v47 }
 0x281   :  { %882 = vmatpush.bf16.msrb.mxu0 %v784_v36 }
 0x285   :  { %883 = vmatpush.bf16.msrb.mxu0 %v783_v23 }
 0x288   :  { %834 = vmatmul.bf16.gmra.mxu3 %v1502_v33 }
 0x289   :  { %884 = vmatpush.bf16.msrb.mxu0 %v782_v24 }
 0x28d   :  { %885 = vmatpush.bf16.msrb.mxu0 %v781_v52 }
 0x291   :  { %886 = vmatpush.bf16.msrb.mxu0 %v780_v56 }
 0x295   :  { %887 = vmatpush.bf16.msrb.mxu0 %v779_v4 }
 0x298   :  { %888 = vmatmul.bf16.vlgmr.msrb.gmra.mxu0 %v1508_v39  ;;  %839 = vmatmul.bf16.gmra.mxu3 %v1520_v51 }
 0x29b   :  { %v800_v10 = vpop.f32.mrf.mxu3 }
 0x2a3   :  { %v802_v17 = vpop.f32.mrf.mxu3 }
 0x2a8   :  { %893 = vmatmul.bf16.gmra.mxu0 %v1514_v45  ;;  %844 = vmatmul.bf16.gmra.mxu3 %v1526_v57  ;;  %v801_v45 = vadd.f32 %v1699_v42, %v800_v10 }
 0x2ab   :  { %v805_v27 = vpop.f32.mrf.mxu3 }
 0x2b3   :  { %v807_v33 = vpop.f32.mrf.mxu3 }
 0x2b8   :  { %898 = vmatmul.bf16.gmra.mxu0 %v1517_v48  ;;  %849 = vmatmul.bf16.gmra.mxu3 %v1534_v0 }
 0x2bb   :  { %v810_v39 = vpop.f32.mrf.mxu3 }
 0x2bc   :  { %v811_v38 = vadd.f32 %v1699_v42, %v810_v39 }
 0x2c3   :  { %v812_v48 = vpop.f32.mrf.mxu3 }
 0x2c4   :  { %v813_v61 = vadd.f32 %v1699_v42, %v812_v48 }
 0x2c8   :  { %903 = vmatmul.bf16.gmra.mxu0 %v1523_v54  ;;  %854 = vmatmul.bf16.gmra.mxu3 %v1544_v11  ;;  %v806_v11 = vadd.f32 %v1699_v42, %v805_v27 }
 0x2cb   :  { %v815_v57 = vpop.f32.mrf.mxu3 }
 0x2d8   :  { %908 = vmatmul.bf16.gmra.mxu0 %v1529_v60  ;;  %859 = vmatmul.bf16.gmra.mxu3 %v1575_v7  ;;  %v803_v60 = vadd.f32 %v1699_v42, %v802_v17 }
 0x2e8   :  { %913 = vmatmul.bf16.gmra.mxu0 %v1539_v5  ;;  %864 = vmatmul.bf16.gmra.mxu3 %v1583_v41 }
 0x2f8   :  { %918 = vmatmul.bf16.gmra.mxu0 %v1549_v19  ;;  %869 = vmatmul.bf16.gmra.mxu3 %v1591_v8  ;;  %v817_v19 = vpop.f32.mrf.mxu3  ;;  %v808_v8 = vadd.f32 %v1699_v42, %v807_v33 }
 0x2f9   :  { %v818_v13 = vadd.f32 %v1699_v42, %v817_v19 }
 0x300   :  { %v820_v41 = vpop.f32.mrf.mxu3 }
 0x308   :  { %923 = vmatmul.bf16.gmra.mxu0 %v1556_v31  ;;  %874 = vmatmul.bf16.gmra.mxu3 %v1599_v46  ;;  %v822_v6 = vpop.f32.mrf.mxu3 }
 0x309   :  { %v823_v15 = vadd.f32 %v1699_v42, %v822_v6 }
 0x310   :  { %v825_v46 = vpop.f32.mrf.mxu3 }
 0x315   :  { %v889_v51 = vpop.f32.mrf.mxu0 }
 0x316   :  { %v890_v54 = vadd.f32 %v889_v51, %v801_v45 }
 0x318   :  { %969 = vst [vmem:[#allocation8] sm:$0xff] %v890_v54  ;;  %928 = vmatmul.bf16.gmra.mxu0 %v1563_v40  ;;  %v827_v50 = vpop.f32.mrf.mxu3 }
 0x319   :  { %v828_v55 = vadd.f32 %v1699_v42, %v827_v50 }
 0x31d   :  { %v891_v0 = vpop.f32.mrf.mxu0 }
 0x31e   :  { %v892_v5 = vadd.f32 %v891_v0, %v803_v60 }
 0x320   :  { %970 = vst [vmem:[#allocation8 + $0x8] sm:$0xff] %v892_v5  ;;  %v830_v4 = vpop.f32.mrf.mxu3 }
 0x325   :  { %v894_v31 = vpop.f32.mrf.mxu0 }
 0x326   :  { %v895_v7 = vadd.f32 %v894_v31, %v806_v11 }
 0x328   :  { %971 = vst [vmem:[#allocation8 + $0x10] sm:$0xff] %v895_v7  ;;  %933 = vmatmul.bf16.gmra.mxu0 %v1573_v63  ;;  %v816_v63 = vadd.f32 %v1699_v42, %v815_v57  ;;  %v832_v56 = vpop.f32.mrf.mxu3 }
 0x329   :  { %v833_v30 = vadd.f32 %v1699_v42, %v832_v56 }
 0x32d   :  { %v896_v40 = vpop.f32.mrf.mxu0 }
 0x32e   :  { %v897_v21 = vadd.f32 %v896_v40, %v808_v8 }
 0x330   :  { %972 = vst [vmem:[#allocation8 + $0x18] sm:$0xff] %v897_v21  ;;  %v835_v12 = vpop.f32.mrf.mxu3 }
 0x335   :  { %v899_v16 = vpop.f32.mrf.mxu0 }
 0x336   :  { %v900_v32 = vadd.f32 %v899_v16, %v811_v38 }
 0x338   :  { %973 = vst [vmem:[#allocation8 + $0x20] sm:$0xff] %v900_v32  ;;  %938 = vmatmul.bf16.gmra.mxu0 %v1581_v28  ;;  %v821_v28 = vadd.f32 %v1699_v42, %v820_v41  ;;  %v837_v29 = vpop.f32.mrf.mxu3 }
 0x339   :  { %v838_v33 = vadd.f32 %v1699_v42, %v837_v29 }
 0x33d   :  { %v901_v53 = vpop.f32.mrf.mxu0 }
 0x33e   :  { %v902_v2 = vadd.f32 %v901_v53, %v813_v61 }
 0x340   :  { %974 = vst [vmem:[#allocation8 + $0x28] sm:$0xff] %v902_v2  ;;  %v840_v22 = vpop.f32.mrf.mxu3 }
 0x341   :  { %v841_v48 = vadd.f32 %v1699_v42, %v840_v22 }
 0x345   :  { %v904_v1 = vpop.f32.mrf.mxu0 }
 0x346   :  { %v905_v43 = vadd.f32 %v904_v1, %v816_v63 }
 0x348   :  { %975 = vst [vmem:[#allocation8 + $0x30] sm:$0xff] %v905_v43  ;;  %943 = vmatmul.bf16.gmra.mxu0 %v1589_v62  ;;  %v826_v62 = vadd.f32 %v1699_v42, %v825_v46  ;;  %v842_v36 = vpop.f32.mrf.mxu3 }
 0x349   :  { %v843_v60 = vadd.f32 %v1699_v42, %v842_v36 }
 0x34d   :  { %v906_v14 = vpop.f32.mrf.mxu0 }
 0x34e   :  { %v907_v59 = vadd.f32 %v906_v14, %v818_v13 }
 0x350   :  { %976 = vst [vmem:[#allocation8 + $0x38] sm:$0xff] %v907_v59  ;;  %v845_v27 = vpop.f32.mrf.mxu3 }
 0x351   :  { %v846_v11 = vadd.f32 %v1699_v42, %v845_v27 }
 0x355   :  { %v909_v26 = vpop.f32.mrf.mxu0 }
 0x356   :  { %v910_v58 = vadd.f32 %v909_v26, %v821_v28 }
 0x358   :  { %977 = vst [vmem:[#allocation8 + $0x40] sm:$0xff] %v910_v58  ;;  %948 = vmatmul.bf16.gmra.mxu0 %v1597_v35  ;;  %v831_v35 = vadd.f32 %v1699_v42, %v830_v4 }
 0x35d   :  { %v911_v52 = vpop.f32.mrf.mxu0 }
 0x35e   :  { %v912_v34 = vadd.f32 %v911_v52, %v823_v15 }
 0x360   :  { %978 = vst [vmem:[#allocation8 + $0x48] sm:$0xff] %v912_v34 }
 0x365   :  { %v914_v24 = vpop.f32.mrf.mxu0 }
 0x366   :  { %v915_v18 = vadd.f32 %v914_v24, %v826_v62 }
 0x368   :  { %979 = vst [vmem:[#allocation8 + $0x50] sm:$0xff] %v915_v18  ;;  %953 = vmatmul.bf16.gmra.mxu0 %v1607_v9  ;;  %v836_v9 = vadd.f32 %v1699_v42, %v835_v12 }
 0x36d   :  { %v916_v20 = vpop.f32.mrf.mxu0 }
 0x36e   :  { %v917_v25 = vadd.f32 %v916_v20, %v828_v55 }
 0x370   :  { %980 = vst [vmem:[#allocation8 + $0x58] sm:$0xff] %v917_v25 }
 0x375   :  { %v919_v49 = vpop.f32.mrf.mxu0 }
 0x376   :  { %v920_v44 = vadd.f32 %v919_v49, %v831_v35 }
 0x378   :  { %981 = vst [vmem:[#allocation8 + $0x60] sm:$0xff] %v920_v44  ;;  %958 = vmatmul.bf16.gmra.mxu0 %v1614_v37  ;;  %v847_v37 = vpop.f32.mrf.mxu3 }
 0x379   :  { %v848_v7 = vadd.f32 %v1699_v42, %v847_v37 }
 0x37d   :  { %v921_v47 = vpop.f32.mrf.mxu0 }
 0x37e   :  { %v922_v23 = vadd.f32 %v921_v47, %v833_v30 }
 0x380   :  { %982 = vst [vmem:[#allocation8 + $0x68] sm:$0xff] %v922_v23  ;;  %v850_v57 = vpop.f32.mrf.mxu3 }
 0x381   :  { %v851_v21 = vadd.f32 %v1699_v42, %v850_v57 }
 0x385   :  { %v924_v10 = vpop.f32.mrf.mxu0 }
 0x386   :  { %v925_v17 = vadd.f32 %v924_v10, %v836_v9 }
 0x388   :  { %983 = vst [vmem:[#allocation8 + $0x70] sm:$0xff] %v925_v17  ;;  %963 = vmatmul.bf16.gmra.mxu0 %v1621_v3  ;;  %v852_v19 = vpop.f32.mrf.mxu3 }
 0x389   :  { %v853_v32 = vadd.f32 %v1699_v42, %v852_v19 }
 0x38d   :  { %v926_v39 = vpop.f32.mrf.mxu0 }
 0x38e   :  { %v927_v45 = vadd.f32 %v926_v39, %v838_v33 }
 0x390   :  { %984 = vst [vmem:[#allocation8 + $0x78] sm:$0xff] %v927_v45  ;;  %v855_v40 = vpop.f32.mrf.mxu3 }
 0x391   :  { %v856_v53 = vadd.f32 %v1699_v42, %v855_v40 }
 0x395   :  { %v929_v51 = vpop.f32.mrf.mxu0 }
 0x396   :  { %v930_v54 = vadd.f32 %v929_v51, %v841_v48 }
 0x398   :  { %985 = vst [vmem:[#allocation8 + $0x80] sm:$0xff] %v930_v54  ;;  %v857_v16 = vpop.f32.mrf.mxu3 }
 0x399   :  { %v858_v1 = vadd.f32 %v1699_v42, %v857_v16 }
 0x39d   :  { %v931_v0 = vpop.f32.mrf.mxu0 }
 0x39e   :  { %v932_v5 = vadd.f32 %v931_v0, %v843_v60 }
 0x3a0   :  { %986 = vst [vmem:[#allocation8 + $0x88] sm:$0xff] %v932_v5  ;;  %v860_v2 = vpop.f32.mrf.mxu3 }
 0x3a1   :  { %v861_v14 = vadd.f32 %v1699_v42, %v860_v2 }
 0x3a5   :  { %v934_v3 = vpop.f32.mrf.mxu0 }
 0x3a6   :  { %v935_v31 = vadd.f32 %v934_v3, %v846_v11 }
 0x3a8   :  { %987 = vst [vmem:[#allocation8 + $0x90] sm:$0xff] %v935_v31  ;;  %v862_v4 = vpop.f32.mrf.mxu3 }
 0x3a9   :  { %v863_v56 = vadd.f32 %v1699_v42, %v862_v4 }
 0x3ad   :  { %v936_v41 = vpop.f32.mrf.mxu0 }
 0x3ae   :  { %v937_v8 = vadd.f32 %v936_v41, %v848_v7 }
 0x3b0   :  { %988 = vst [vmem:[#allocation8 + $0x98] sm:$0xff] %v937_v8  ;;  %v865_v26 = vpop.f32.mrf.mxu3 }
 0x3b1   :  { %v866_v34 = vadd.f32 %v1699_v42, %v865_v26 }
 0x3b5   :  { %v939_v38 = vpop.f32.mrf.mxu0 }
 0x3b6   :  { %v940_v6 = vadd.f32 %v939_v38, %v851_v21 }
 0x3b8   :  { %989 = vst [vmem:[#allocation8 + $0xa0] sm:$0xff] %v940_v6  ;;  %v867_v52 = vpop.f32.mrf.mxu3 }
 0x3b9   :  { %v868_v18 = vadd.f32 %v1699_v42, %v867_v52 }
 0x3bd   :  { %v941_v46 = vpop.f32.mrf.mxu0 }
 0x3be   :  { %v942_v61 = vadd.f32 %v941_v46, %v853_v32 }
 0x3c0   :  { %990 = vst [vmem:[#allocation8 + $0xa8] sm:$0xff] %v942_v61  ;;  %v870_v24 = vpop.f32.mrf.mxu3 }
 0x3c1   :  { %v871_v20 = vadd.f32 %v1699_v42, %v870_v24 }
 0x3c5   :  { %v944_v63 = vpop.f32.mrf.mxu0 }
 0x3c6   :  { %v945_v50 = vadd.f32 %v944_v63, %v856_v53 }
 0x3c8   :  { %991 = vst [vmem:[#allocation8 + $0xb0] sm:$0xff] %v945_v50  ;;  %v872_v35 = vpop.f32.mrf.mxu3 }
 0x3c9   :  { %v873_v49 = vadd.f32 %v1699_v42, %v872_v35 }
 0x3cd   :  { %v946_v43 = vpop.f32.mrf.mxu0 }
 0x3ce   :  { %v947_v13 = vadd.f32 %v946_v43, %v858_v1 }
 0x3d0   :  { %992 = vst [vmem:[#allocation8 + $0xb8] sm:$0xff] %v947_v13  ;;  %v875_v47 = vpop.f32.mrf.mxu3 }
 0x3d1   :  { %v876_v36 = vadd.f32 %v1699_v42, %v875_v47 }
 0x3d5   :  { %v949_v59 = vpop.f32.mrf.mxu0 }
 0x3d6   :  { %v950_v28 = vadd.f32 %v949_v59, %v861_v14 }
 0x3d8   :  { %993 = vst [vmem:[#allocation8 + $0xc0] sm:$0xff] %v950_v28  ;;  %v877_v10 = vpop.f32.mrf.mxu3 }
 0x3d9   :  { %v878_v17 = vadd.f32 %v1699_v42, %v877_v10 }
 0x3dd   :  { %v951_v58 = vpop.f32.mrf.mxu0 }
 0x3de   :  { %v952_v15 = vadd.f32 %v951_v58, %v863_v56 }
 0x3e0   :  { %994 = vst [vmem:[#allocation8 + $0xc8] sm:$0xff] %v952_v15 }
 0x3e5   :  { %v954_v12 = vpop.f32.mrf.mxu0 }
 0x3e6   :  { %v955_v62 = vadd.f32 %v954_v12, %v866_v34 }
 0x3e8   :  { %995 = vst [vmem:[#allocation8 + $0xd0] sm:$0xff] %v955_v62 }
 0x3ed   :  { %v956_v29 = vpop.f32.mrf.mxu0 }
 0x3ee   :  { %v957_v55 = vadd.f32 %v956_v29, %v868_v18 }
 0x3f0   :  { %996 = vst [vmem:[#allocation8 + $0xd8] sm:$0xff] %v957_v55 }
 0x3f5   :  { %v959_v25 = vpop.f32.mrf.mxu0 }
 0x3f6   :  { %v960_v22 = vadd.f32 %v959_v25, %v871_v20 }
 0x3f8   :  { %997 = vst [vmem:[#allocation8 + $0xe0] sm:$0xff] %v960_v22 }
 0x3fd   :  { %v961_v44 = vpop.f32.mrf.mxu0 }
 0x3fe   :  { %v962_v30 = vadd.f32 %v961_v44, %v873_v49 }
 0x400   :  { %998 = vst [vmem:[#allocation8 + $0xe8] sm:$0xff] %v962_v30 }
 0x405   :  { %v964_v23 = vpop.f32.mrf.mxu0 }
 0x406   :  { %v965_v9 = vadd.f32 %v964_v23, %v876_v36 }
 0x408   :  { %999 = vst [vmem:[#allocation8 + $0xf0] sm:$0xff] %v965_v9 }
 0x40d   :  { %v966_v27 = vpop.f32.mrf.mxu0 }
 0x40e   :  { %v967_v33 = vadd.f32 %v966_v27, %v878_v17 }
 0x410   :  { %1000 = vst [vmem:[#allocation8 + $0xf8] sm:$0xff] %v967_v33 }
 0x411   :  { %1013 = dma.vmem_to_hbm [thread:$0]  %s1006_s12, 4096, %s1008_s15, [#allocation4], %s1441_s30, %s1441_s30, %s1442_s6  }
 0x412   :  { %1435 = dma.done.wait [#allocation4], 4096  }
 0x413   :  { %1436 = vsyncadd [#allocation4], 4294963200 }
 0x414   :  { %1018 = vsyncpa [#allocation3], 1 }
 0x415   :  { %1019 = vsyncpa [#allocation6], 1 }
 0x416   :  { %1020 = vsyncpa [#allocation4], 1 }

</bundles_post_ra>
